<compile_context>
chip_gen: v7x
topology: tpu7x:2x2x1
jax: 0.10.0
libtpu: 0.0.40
codegen_flags: <defaults>
</compile_context>

<pallas_src>
import math

import jax
import jax.numpy as jnp
from jax.experimental import pallas as pl
from jax.experimental.pallas import tpu as pltpu


def _triple(x):
    if isinstance(x, int):
        return (x, x, x)
    if isinstance(x, tuple) and len(x) == 3:
        return x
    raise ValueError(f"expected int or 3-tuple, got {type(x)}")


# --------------- VMEM budgets (v5e/v6e: 128 MiB, v7x: 64 MiB) ----------------

def _vmem_budget_and_limit():
    try:
        cap = int(pltpu.get_tpu_info().vmem_capacity_bytes)
    except Exception:
        cap = 64 << 20            # conservative fallback (v7x-sized)
    limit = min((cap * 3) // 4, 100 << 20)   # scoped VMEM limit handed to Mosaic
    budget = (cap * 3) // 10                 # what the tile picker may spend
    return budget, limit


_VMEM_BUDGET, _VMEM_LIMIT = _vmem_budget_and_limit()


# ------------------------------ Pallas kernel --------------------------------

def _matmul_bias_kernel(w_ref, b_ref, a_ref, o_ref):
    # w: (gb, Cog, Kg)    per-group weights (resident across the inner M loop)
    # b: (gb, Cog, 1)     f32 bias (zeros when the module has no bias)
    # a: (1, gb, Kg, tm)  K-major im2col tile, lane-dense in M
    # o: (1, gb, Cog, tm) f32 output tile (lane-dense stores)
    for g in range(w_ref.shape[0]):           # static, unrolled group batch
        acc = jnp.dot(w_ref[g], a_ref[0, g], preferred_element_type=jnp.float32)
        o_ref[0, g, :, :] = (acc + b_ref[g]).astype(o_ref.dtype)


def _pick_tm(M, Kg, Cog, gb, in_bytes, budget):
    """Largest lane tile (multiple of 128) whose double-buffered blocks fit."""
    if M <= 128:
        return M                               # full-dim block is always legal
    w_res = 2 * gb * Cog * Kg * in_bytes + 2 * gb * Cog * 4
    for tm in (4096, 2048, 1024, 512, 256, 128):
        if tm > M:
            continue
        need = w_res + 2 * gb * Kg * tm * in_bytes + 2 * gb * Cog * tm * 4
        if need <= budget:
            return tm
    return 128


def _grouped_matmul_bias(w_gk, bias_gk, patches):
    """w:(G,Cog,Kg), bias:(G,Cog,1) f32, patches:(N,G,Kg,M) -> (N,G,Cog,M) f32."""
    N, G, Kg, M = patches.shape
    Cog = w_gk.shape[1]

    # Pad K to a multiple of 8 (sublanes) so tiny per-phase K never hits an
    # awkward MXU layout; the zero rows contribute nothing.
    k_pad = (-Kg) % 8
    if k_pad:
        w_gk = jnp.pad(w_gk, ((0, 0), (0, 0), (0, k_pad)))
        patches = jnp.pad(patches, ((0, 0), (0, 0), (0, k_pad), (0, 0)))
        Kg += k_pad

    in_bytes = jnp.dtype(w_gk.dtype).itemsize
    gb = G if (Cog < 8 and G <= 8) else 1      # batch small groups per step
    tm = _pick_tm(M, Kg, Cog, gb, in_bytes, _VMEM_BUDGET)
    n_m = pl.cdiv(M, tm)

    cost = pl.CostEstimate(
        flops=2 * N * G * Cog * Kg * M,
        transcendentals=0,
        bytes_accessed=in_bytes * (N * G * Kg * M + G * Cog * Kg)
        + 4 * (N * G * Cog * M + G * Cog),
    )
    return pl.pallas_call(
        _matmul_bias_kernel,
        out_shape=jax.ShapeDtypeStruct((N, G, Cog, M), jnp.float32),
        grid_spec=pltpu.PrefetchScalarGridSpec(
            num_scalar_prefetch=0,
            # M tiles innermost: the weight/bias block indices are constant over
            # that axis, so they stay VMEM-resident across the inner loop.
            grid=(N, G // gb, n_m),
            in_specs=[
                pl.BlockSpec((gb, Cog, Kg), lambda n, g, i: (g, 0, 0)),
                pl.BlockSpec((gb, Cog, 1), lambda n, g, i: (g, 0, 0)),
                pl.BlockSpec((1, gb, Kg, tm), lambda n, g, i: (n, g, 0, i)),
            ],
            out_specs=pl.BlockSpec((1, gb, Cog, tm), lambda n, g, i: (n, g, 0, i)),
        ),
        compiler_params=pltpu.CompilerParams(
            # Every grid step writes a distinct output block -> all parallel
            # (lets v7x megacore shard whichever axis is big).
            dimension_semantics=("parallel", "parallel", "parallel"),
            vmem_limit_bytes=_VMEM_LIMIT,
        ),
        cost_estimate=cost,
    )(w_gk, bias_gk, patches)


# ----------------------- stride-phase (sub-pixel) plan ------------------------

def _phase_plan_1d(n_in, k, s, p, d):
    """Sub-pixel decomposition of one spatial dim of the reference lowering
    (zero-upsample by s, pad by max(0, 2*((k-1)*d - p)) split front/back,
    stride-1 dilated conv with flipped weights).

    Returns (out_len, phases, pad_lo, pad_hi); each phase is
    (r, out_len_r, [(tap_index, input_offset), ...]); pad_lo/pad_hi is the zero
    padding needed on the ORIGINAL-resolution input so every read is in bounds.
    """
    up = (n_in - 1) * s + 1
    tot = max(0, 2 * ((k - 1) * d - p))
    pf = tot // 2
    out = up + tot - d * (k - 1)
    phases = []
    min_off, max_idx = 0, n_in - 1
    for r in range(s):
        n_r = len(range(r, out, s))
        taps = [(t, (r + t * d - pf) // s) for t in range(k)
                if (r + t * d - pf) % s == 0]
        phases.append((r, n_r, taps))
        if n_r > 0:
            for _, off in taps:
                min_off = min(min_off, off)
                max_idx = max(max_idx, n_r - 1 + off)
    return out, phases, max(0, -min_off), max(0, max_idx - (n_in - 1))


# ---------------------------------- module ------------------------------------

class ConvTranspose3d:
    """Pallas-TPU ConvTranspose3d matching the custom PyTorch module's forward."""

    def __init__(self, in_channels, out_channels, kernel_size, stride=1,
                 padding=0, output_padding=0, groups=1, bias=True, dilation=1,
                 *, key, compute_dtype=jnp.bfloat16):
        self.in_channels = in_channels
        self.out_channels = out_channels
        self.kernel_size = _triple(kernel_size)
        self.stride = _triple(stride)
        self.padding = _triple(padding)
        self.output_padding = _triple(output_padding)
        self.groups = groups
        self.dilation = _triple(dilation)
        self.compute_dtype = compute_dtype
        assert in_channels % groups == 0 and out_channels % groups == 0

        kd, kh, kw = self.kernel_size
        # PyTorch kaiming_uniform_(a=sqrt(5)): bound = 1/sqrt(fan_in),
        # fan_in = weight.size(1) * receptive_field = (Cout//G)*kd*kh*kw
        fan_in = (out_channels // groups) * kd * kh * kw
        bound = 1.0 / math.sqrt(fan_in)
        k_w, k_b = jax.random.split(key)
        self.weight = jax.random.uniform(
            k_w, (in_channels, out_channels // groups, kd, kh, kw),
            jnp.float32, -bound, bound)
        self.bias = (jax.random.uniform(k_b, (out_channels,), jnp.float32,
                                        -bound, bound) if bias else None)

    def _flipped_grouped_weight(self):
        G = self.groups
        Cig = self.in_channels // G
        Cog = self.out_channels // G
        kd, kh, kw = self.kernel_size
        cw6 = jnp.transpose(self.weight.reshape(G, Cig, Cog, kd, kh, kw),
                            (0, 2, 1, 3, 4, 5))
        return jnp.flip(cw6, axis=(3, 4, 5))       # (G, Cog, Cig, kd, kh, kw)

    # -------------------------------- forward --------------------------------

    def __call__(self, x):
        N, C_in, D_in, H_in, W_in = x.shape
        kd, kh, kw = self.kernel_size
        sd, sh, sw = self.stride
        pd, ph, pw = self.padding
        dd, dh, dw = self.dilation
        G = self.groups
        Cig = C_in // G
        Cog = self.out_channels // G

        Do, d_phases, pdl, pdh = _phase_plan_1d(D_in, kd, sd, pd, dd)
        Ho, h_phases, phl, phh = _phase_plan_1d(H_in, kh, sh, ph, dh)
        Wo, w_phases, pwl, pwh = _phase_plan_1d(W_in, kw, sw, pw, dw)

        # Original-resolution input, padded once for all phases (no upsampling).
        xc = jnp.pad(x.astype(self.compute_dtype),
                     ((0, 0), (0, 0), (pdl, pdh), (phl, phh), (pwl, pwh)))
        cw6 = self._flipped_grouped_weight().astype(self.compute_dtype)
        bias_vec = (self.bias if self.bias is not None
                    else jnp.zeros((self.out_channels,), jnp.float32))
        bias_gk = bias_vec.reshape(G, Cog, 1).astype(jnp.float32)

        single_phase = (self.stride == (1, 1, 1)
                        and self.output_padding == (0, 0, 0))

        results = []
        for rd, Dr, dtaps in d_phases:
            for rh, Hr, htaps in h_phases:
                for rw, Wr, wtaps in w_phases:
                    if (Dr == 0 or Hr == 0 or Wr == 0
                            or not dtaps or not htaps or not wtaps):
                        continue
                    # Phase weight, K rows ordered (cig, td, th, tw).
                    wg = cw6[:, :, :, [t for t, _ in dtaps]]
                    wg = wg[:, :, :, :, [t for t, _ in htaps]]
                    wg = wg[:, :, :, :, :, [t for t, _ in wtaps]]
                    Kg = Cig * len(dtaps) * len(htaps) * len(wtaps)
                    wg = wg.reshape(G, Cog, Kg)

                    # im2col on the original-resolution input (no zero rows),
                    # K-major with per-sample M = Dr*Hr*Wr so the kernel writes
                    # NCDHW directly.
                    slabs = []
                    for _, od in dtaps:
                        for _, oh in htaps:
                            for _, ow in wtaps:
                                slabs.append(
                                    xc[:, :,
                                       od + pdl: od + pdl + Dr,
                                       oh + phl: oh + phl + Hr,
                                       ow + pwl: ow + pwl + Wr])
                    a = jnp.stack(slabs, axis=0)       # (T, N, C, Dr, Hr, Wr)
                    a = a.reshape(len(slabs), N, G, Cig, Dr, Hr, Wr)
                    a = jnp.transpose(a, (1, 2, 3, 0, 4, 5, 6))
                    a = a.reshape(N, G, Kg, Dr * Hr * Wr)

                    y = _grouped_matmul_bias(wg, bias_gk, a)   # (N,G,Cog,Msp)
                    y = y.reshape(N, self.out_channels, Dr, Hr, Wr)
                    results.append((rd, rh, rw, y))

        # Fast path: stride 1 and no output padding -> single phase covers the
        # whole output, bias already fused -> zero extra passes.
        if single_phase and len(results) == 1:
            return results[0][3]

        opd, oph, opw = self.output_padding
        out_shape = (N, self.out_channels, Do + opd, Ho + oph, Wo + opw)
        # The output_padding border must equal the bias (reference adds bias
        # AFTER padding), so initialize with bias and overwrite covered cells.
        if self.bias is not None:
            buf = jnp.broadcast_to(self.bias.reshape(1, -1, 1, 1, 1),
                                   out_shape).astype(jnp.float32)
        else:
            buf = jnp.zeros(out_shape, jnp.float32)
        # TODO(synk): this strided interleave of phases is XLA glue; it could be
        # folded into the kernel's output writes with strided element maps.
        for rd, rh, rw, y in results:
            buf = buf.at[:, :, rd:Do:sd, rh:Ho:sh, rw:Wo:sw].set(y)
        return buf

    # ---------------------------- pure-JAX reference --------------------------

    def reference(self, x):
        """Independent mirror of the PyTorch module (upsample + pad + conv)."""
        N, C_in, D_in, H_in, W_in = x.shape
        sd, sh, sw = self.stride
        kd, kh, kw = self.kernel_size
        dd, dh, dw = self.dilation
        pd, ph, pw = self.padding
        G = self.groups
        Cig = C_in // G
        Cog = self.out_channels // G

        D_up = (D_in - 1) * sd + 1
        H_up = (H_in - 1) * sh + 1
        W_up = (W_in - 1) * sw + 1
        x_up = jnp.zeros((N, C_in, D_up, H_up, W_up), x.dtype)
        x_up = x_up.at[:, :, ::sd, ::sh, ::sw].set(x)

        pad_d = max(0, 2 * ((kd - 1) * dd - pd))
        pad_h = max(0, 2 * ((kh - 1) * dh - ph))
        pad_w = max(0, 2 * ((kw - 1) * dw - pw))
        x_pad = jnp.pad(x_up, ((0, 0), (0, 0),
                               (pad_d // 2, pad_d - pad_d // 2),
                               (pad_h // 2, pad_h - pad_h // 2),
                               (pad_w // 2, pad_w - pad_w // 2)))

        cw_flat = self._flipped_grouped_weight().reshape(G * Cog, Cig, kd, kh, kw)
        conv = jax.lax.conv_general_dilated(
            x_pad, cw_flat, window_strides=(1, 1, 1), padding="VALID",
            rhs_dilation=self.dilation,
            dimension_numbers=("NCDHW", "OIDHW", "NCDHW"),
            feature_group_count=G)
        opd, oph, opw = self.output_padding
        out = jnp.pad(conv, ((0, 0), (0, 0), (0, opd), (0, oph), (0, opw)))
        if self.bias is not None:
            out = out + self.bias.reshape(1, -1, 1, 1, 1)
        return out


if __name__ == "__main__":
    key = jax.random.PRNGKey(0)
    k_x1, k_p1, k_x2, k_p2 = jax.random.split(key, 4)

    # config 1: stride 2, groups 2, padding 1, output_padding 1, bias;
    # bf16 MXU operands (f32 accumulate) -> loose tolerance vs f32 reference.
    mod1 = ConvTranspose3d(in_channels=4, out_channels=8, kernel_size=3,
                           stride=2, padding=1, output_padding=1, groups=2,
                           bias=True, dilation=1, key=k_p1,
                           compute_dtype=jnp.bfloat16)
    x1 = jax.random.normal(k_x1, (2, 4, 5, 5, 5), jnp.float32)
    y1 = jax.block_until_ready(jax.jit(lambda v: mod1(v))(x1))
    y1_ref = jax.block_until_ready(mod1.reference(x1))
    assert y1.shape == y1_ref.shape, (y1.shape, y1_ref.shape)
    assert jnp.allclose(y1, y1_ref, atol=5e-2, rtol=5e-2), float(
        jnp.max(jnp.abs(y1 - y1_ref)))

    # config 2: dilation 2, no bias, groups 1, stride 1; f32 path, tight check.
    mod2 = ConvTranspose3d(in_channels=6, out_channels=6, kernel_size=2,
                           stride=1, padding=0, output_padding=0, groups=1,
                           bias=False, dilation=2, key=k_p2,
                           compute_dtype=jnp.float32)
    x2 = jax.random.normal(k_x2, (1, 6, 6, 6, 6), jnp.float32)
    y2 = jax.block_until_ready(jax.jit(lambda v: mod2(v))(x2))
    y2_ref = jax.block_until_ready(mod2.reference(x2))
    assert y2.shape == y2_ref.shape, (y2.shape, y2_ref.shape)
    assert jnp.allclose(y2, y2_ref, atol=5e-4, rtol=5e-4), float(
        jnp.max(jnp.abs(y2 - y2_ref)))

    print("KERNEL_OK")
</pallas_src>

<mosaic_0001>
module attributes {stable_mosaic.version = 11 : i64} {
  func.func @_matmul_bias_kernel(%arg0: i32, %arg1: i32, %arg2: i32, %arg3: memref<2x4x8xbf16, #tpu.memory_space<vmem>>, %arg4: memref<2x4x1xf32, #tpu.memory_space<vmem>>, %arg5: memref<1x2x8x125xbf16, #tpu.memory_space<vmem>>, %arg6: memref<1x2x4x125xf32, #tpu.memory_space<vmem>>) attributes {dimension_semantics = [#tpu.dimension_semantics<parallel>, #tpu.dimension_semantics<parallel>, #tpu.dimension_semantics<parallel>], iteration_bounds = array<i64: 2, 1, 1>, scalar_prefetch = 0 : i64, scratch_operands = 0 : i64, tpu.core_type = #tpu.core_type<tc>, window_params = [{transform_indices = @transform_0, window_bounds = array<i64: 2, 4, 8>}, {transform_indices = @transform_1, window_bounds = array<i64: 2, 4, 1>}, {transform_indices = @transform_2, window_bounds = array<i64: 1, 2, 8, 125>}, {transform_indices = @transform_3, window_bounds = array<i64: 1, 2, 4, 125>}]} {
    %c0 = arith.constant 0 : index
    %c0_0 = arith.constant 0 : index
    %c0_1 = arith.constant 0 : index
    %0 = vector.load %arg3[%c0, %c0_0, %c0_1] : memref<2x4x8xbf16, #tpu.memory_space<vmem>>, vector<1x4x8xbf16>
    %1 = vector.shape_cast %0 : vector<1x4x8xbf16> to vector<4x8xbf16>
    %c0_2 = arith.constant 0 : index
    %c0_3 = arith.constant 0 : index
    %c0_4 = arith.constant 0 : index
    %c0_5 = arith.constant 0 : index
    %2 = vector.load %arg5[%c0_2, %c0_3, %c0_4, %c0_5] : memref<1x2x8x125xbf16, #tpu.memory_space<vmem>>, vector<1x1x8x125xbf16>
    %3 = vector.shape_cast %2 : vector<1x1x8x125xbf16> to vector<8x125xbf16>
    %cst = arith.constant dense<0.000000e+00> : vector<4x125xf32>
    %4 = tpu.matmul %1, %3, %cst {dimension_numbers = #tpu.dot_dimension_numbers<[1], [0], [0], [1], [0, 0, 1, 1], [], []>} : vector<4x8xbf16>, vector<8x125xbf16>, vector<4x125xf32> -> vector<4x125xf32>
    %c0_6 = arith.constant 0 : index
    %c0_7 = arith.constant 0 : index
    %c0_8 = arith.constant 0 : index
    %5 = vector.load %arg4[%c0_6, %c0_7, %c0_8] : memref<2x4x1xf32, #tpu.memory_space<vmem>>, vector<1x4x1xf32>
    %6 = vector.shape_cast %5 : vector<1x4x1xf32> to vector<4x1xf32>
    %7 = vector.broadcast %6 : vector<4x1xf32> to vector<4x125xf32>
    %8 = arith.addf %4, %7 : vector<4x125xf32>
    %c0_9 = arith.constant 0 : index
    %c0_10 = arith.constant 0 : index
    %c0_11 = arith.constant 0 : index
    %c0_12 = arith.constant 0 : index
    %9 = vector.load %arg6[%c0_9, %c0_10, %c0_11, %c0_12] : memref<1x2x4x125xf32, #tpu.memory_space<vmem>>, vector<1x1x4x125xf32>
    %10 = vector.shape_cast %9 : vector<1x1x4x125xf32> to vector<4x125xf32>
    %11 = vector.shape_cast %8 : vector<4x125xf32> to vector<1x1x4x125xf32>
    tpu.vector_store %arg6[%c0_9, %c0_10, %c0_11, %c0_12], %11 {strides = array<i32>} : memref<1x2x4x125xf32, #tpu.memory_space<vmem>>, vector<1x1x4x125xf32>,
    %c1 = arith.constant 1 : index
    %c0_13 = arith.constant 0 : index
    %c0_14 = arith.constant 0 : index
    %12 = vector.load %arg3[%c1, %c0_13, %c0_14] : memref<2x4x8xbf16, #tpu.memory_space<vmem>>, vector<1x4x8xbf16>
    %13 = vector.shape_cast %12 : vector<1x4x8xbf16> to vector<4x8xbf16>
    %c0_15 = arith.constant 0 : index
    %c1_16 = arith.constant 1 : index
    %c0_17 = arith.constant 0 : index
    %c0_18 = arith.constant 0 : index
    %14 = vector.load %arg5[%c0_15, %c1_16, %c0_17, %c0_18] : memref<1x2x8x125xbf16, #tpu.memory_space<vmem>>, vector<1x1x8x125xbf16>
    %15 = vector.shape_cast %14 : vector<1x1x8x125xbf16> to vector<8x125xbf16>
    %cst_19 = arith.constant dense<0.000000e+00> : vector<4x125xf32>
    %16 = tpu.matmul %13, %15, %cst_19 {dimension_numbers = #tpu.dot_dimension_numbers<[1], [0], [0], [1], [0, 0, 1, 1], [], []>} : vector<4x8xbf16>, vector<8x125xbf16>, vector<4x125xf32> -> vector<4x125xf32>
    %c1_20 = arith.constant 1 : index
    %c0_21 = arith.constant 0 : index
    %c0_22 = arith.constant 0 : index
    %17 = vector.load %arg4[%c1_20, %c0_21, %c0_22] : memref<2x4x1xf32, #tpu.memory_space<vmem>>, vector<1x4x1xf32>
    %18 = vector.shape_cast %17 : vector<1x4x1xf32> to vector<4x1xf32>
    %19 = vector.broadcast %18 : vector<4x1xf32> to vector<4x125xf32>
    %20 = arith.addf %16, %19 : vector<4x125xf32>
    %c0_23 = arith.constant 0 : index
    %c1_24 = arith.constant 1 : index
    %c0_25 = arith.constant 0 : index
    %c0_26 = arith.constant 0 : index
    %21 = vector.load %arg6[%c0_23, %c1_24, %c0_25, %c0_26] : memref<1x2x4x125xf32, #tpu.memory_space<vmem>>, vector<1x1x4x125xf32>
    %22 = vector.shape_cast %21 : vector<1x1x4x125xf32> to vector<4x125xf32>
    %23 = vector.shape_cast %20 : vector<4x125xf32> to vector<1x1x4x125xf32>
    tpu.vector_store %arg6[%c0_23, %c1_24, %c0_25, %c0_26], %23 {strides = array<i32>} : memref<1x2x4x125xf32, #tpu.memory_space<vmem>>, vector<1x1x4x125xf32>,
    return
  }
  func.func @transform_0(%arg0: i32, %arg1: i32, %arg2: i32) -> (i32, i32, i32) {
    %c0_i32 = arith.constant 0 : i32
    %c0_i32_0 = arith.constant 0 : i32
    %c0_i32_1 = arith.constant 0 : i32
    return %arg1, %c0_i32, %c0_i32_0 : i32, i32, i32
  }
  func.func @transform_1(%arg0: i32, %arg1: i32, %arg2: i32) -> (i32, i32, i32) {
    %c0_i32 = arith.constant 0 : i32
    %c0_i32_0 = arith.constant 0 : i32
    %c0_i32_1 = arith.constant 0 : i32
    return %arg1, %c0_i32, %c0_i32_0 : i32, i32, i32
  }
  func.func @transform_2(%arg0: i32, %arg1: i32, %arg2: i32) -> (i32, i32, i32, i32) {
    %c0_i32 = arith.constant 0 : i32
    %c0_i32_0 = arith.constant 0 : i32
    return %arg0, %arg1, %c0_i32, %arg2 : i32, i32, i32, i32
  }
  func.func @transform_3(%arg0: i32, %arg1: i32, %arg2: i32) -> (i32, i32, i32, i32) {
    %c0_i32 = arith.constant 0 : i32
    %c0_i32_0 = arith.constant 0 : i32
    return %arg0, %arg1, %c0_i32, %arg2 : i32, i32, i32, i32
  }
}

module attributes {stable_mosaic.version = 11 : i64} {
  func.func @_matmul_bias_kernel(%arg0: i32, %arg1: i32, %arg2: i32, %arg3: memref<2x4x8xbf16, #tpu.memory_space<vmem>>, %arg4: memref<2x4x1xf32, #tpu.memory_space<vmem>>, %arg5: memref<1x2x8x100xbf16, #tpu.memory_space<vmem>>, %arg6: memref<1x2x4x100xf32, #tpu.memory_space<vmem>>) attributes {dimension_semantics = [#tpu.dimension_semantics<parallel>, #tpu.dimension_semantics<parallel>, #tpu.dimension_semantics<parallel>], iteration_bounds = array<i64: 2, 1, 1>, scalar_prefetch = 0 : i64, scratch_operands = 0 : i64, tpu.core_type = #tpu.core_type<tc>, window_params = [{transform_indices = @transform_0, window_bounds = array<i64: 2, 4, 8>}, {transform_indices = @transform_1, window_bounds = array<i64: 2, 4, 1>}, {transform_indices = @transform_2, window_bounds = array<i64: 1, 2, 8, 100>}, {transform_indices = @transform_3, window_bounds = array<i64: 1, 2, 4, 100>}]} {
    %c0 = arith.constant 0 : index
    %c0_0 = arith.constant 0 : index
    %c0_1 = arith.constant 0 : index
    %0 = vector.load %arg3[%c0, %c0_0, %c0_1] : memref<2x4x8xbf16, #tpu.memory_space<vmem>>, vector<1x4x8xbf16>
    %1 = vector.shape_cast %0 : vector<1x4x8xbf16> to vector<4x8xbf16>
    %c0_2 = arith.constant 0 : index
    %c0_3 = arith.constant 0 : index
    %c0_4 = arith.constant 0 : index
    %c0_5 = arith.constant 0 : index
    %2 = vector.load %arg5[%c0_2, %c0_3, %c0_4, %c0_5] : memref<1x2x8x100xbf16, #tpu.memory_space<vmem>>, vector<1x1x8x100xbf16>
    %3 = vector.shape_cast %2 : vector<1x1x8x100xbf16> to vector<8x100xbf16>
    %cst = arith.constant dense<0.000000e+00> : vector<4x100xf32>
    %4 = tpu.matmul %1, %3, %cst {dimension_numbers = #tpu.dot_dimension_numbers<[1], [0], [0], [1], [0, 0, 1, 1], [], []>} : vector<4x8xbf16>, vector<8x100xbf16>, vector<4x100xf32> -> vector<4x100xf32>
    %c0_6 = arith.constant 0 : index
    %c0_7 = arith.constant 0 : index
    %c0_8 = arith.constant 0 : index
    %5 = vector.load %arg4[%c0_6, %c0_7, %c0_8] : memref<2x4x1xf32, #tpu.memory_space<vmem>>, vector<1x4x1xf32>
    %6 = vector.shape_cast %5 : vector<1x4x1xf32> to vector<4x1xf32>
    %7 = vector.broadcast %6 : vector<4x1xf32> to vector<4x100xf32>
    %8 = arith.addf %4, %7 : vector<4x100xf32>
    %c0_9 = arith.constant 0 : index
    %c0_10 = arith.constant 0 : index
    %c0_11 = arith.constant 0 : index
    %c0_12 = arith.constant 0 : index
    %9 = vector.load %arg6[%c0_9, %c0_10, %c0_11, %c0_12] : memref<1x2x4x100xf32, #tpu.memory_space<vmem>>, vector<1x1x4x100xf32>
    %10 = vector.shape_cast %9 : vector<1x1x4x100xf32> to vector<4x100xf32>
    %11 = vector.shape_cast %8 : vector<4x100xf32> to vector<1x1x4x100xf32>
    tpu.vector_store %arg6[%c0_9, %c0_10, %c0_11, %c0_12], %11 {strides = array<i32>} : memref<1x2x4x100xf32, #tpu.memory_space<vmem>>, vector<1x1x4x100xf32>,
    %c1 = arith.constant 1 : index
    %c0_13 = arith.constant 0 : index
    %c0_14 = arith.constant 0 : index
    %12 = vector.load %arg3[%c1, %c0_13, %c0_14] : memref<2x4x8xbf16, #tpu.memory_space<vmem>>, vector<1x4x8xbf16>
    %13 = vector.shape_cast %12 : vector<1x4x8xbf16> to vector<4x8xbf16>
    %c0_15 = arith.constant 0 : index
    %c1_16 = arith.constant 1 : index
    %c0_17 = arith.constant 0 : index
    %c0_18 = arith.constant 0 : index
    %14 = vector.load %arg5[%c0_15, %c1_16, %c0_17, %c0_18] : memref<1x2x8x100xbf16, #tpu.memory_space<vmem>>, vector<1x1x8x100xbf16>
    %15 = vector.shape_cast %14 : vector<1x1x8x100xbf16> to vector<8x100xbf16>
    %cst_19 = arith.constant dense<0.000000e+00> : vector<4x100xf32>
    %16 = tpu.matmul %13, %15, %cst_19 {dimension_numbers = #tpu.dot_dimension_numbers<[1], [0], [0], [1], [0, 0, 1, 1], [], []>} : vector<4x8xbf16>, vector<8x100xbf16>, vector<4x100xf32> -> vector<4x100xf32>
    %c1_20 = arith.constant 1 : index
    %c0_21 = arith.constant 0 : index
    %c0_22 = arith.constant 0 : index
    %17 = vector.load %arg4[%c1_20, %c0_21, %c0_22] : memref<2x4x1xf32, #tpu.memory_space<vmem>>, vector<1x4x1xf32>
    %18 = vector.shape_cast %17 : vector<1x4x1xf32> to vector<4x1xf32>
    %19 = vector.broadcast %18 : vector<4x1xf32> to vector<4x100xf32>
    %20 = arith.addf %16, %19 : vector<4x100xf32>
    %c0_23 = arith.constant 0 : index
    %c1_24 = arith.constant 1 : index
    %c0_25 = arith.constant 0 : index
    %c0_26 = arith.constant 0 : index
    %21 = vector.load %arg6[%c0_23, %c1_24, %c0_25, %c0_26] : memref<1x2x4x100xf32, #tpu.memory_space<vmem>>, vector<1x1x4x100xf32>
    %22 = vector.shape_cast %21 : vector<1x1x4x100xf32> to vector<4x100xf32>
    %23 = vector.shape_cast %20 : vector<4x100xf32> to vector<1x1x4x100xf32>
    tpu.vector_store %arg6[%c0_23, %c1_24, %c0_25, %c0_26], %23 {strides = array<i32>} : memref<1x2x4x100xf32, #tpu.memory_space<vmem>>, vector<1x1x4x100xf32>,
    return
  }
  func.func @transform_0(%arg0: i32, %arg1: i32, %arg2: i32) -> (i32, i32, i32) {
    %c0_i32 = arith.constant 0 : i32
    %c0_i32_0 = arith.constant 0 : i32
    %c0_i32_1 = arith.constant 0 : i32
    return %arg1, %c0_i32, %c0_i32_0 : i32, i32, i32
  }
  func.func @transform_1(%arg0: i32, %arg1: i32, %arg2: i32) -> (i32, i32, i32) {
    %c0_i32 = arith.constant 0 : i32
    %c0_i32_0 = arith.constant 0 : i32
    %c0_i32_1 = arith.constant 0 : i32
    return %arg1, %c0_i32, %c0_i32_0 : i32, i32, i32
  }
  func.func @transform_2(%arg0: i32, %arg1: i32, %arg2: i32) -> (i32, i32, i32, i32) {
    %c0_i32 = arith.constant 0 : i32
    %c0_i32_0 = arith.constant 0 : i32
    return %arg0, %arg1, %c0_i32, %arg2 : i32, i32, i32, i32
  }
  func.func @transform_3(%arg0: i32, %arg1: i32, %arg2: i32) -> (i32, i32, i32, i32) {
    %c0_i32 = arith.constant 0 : i32
    %c0_i32_0 = arith.constant 0 : i32
    return %arg0, %arg1, %c0_i32, %arg2 : i32, i32, i32, i32
  }
}

module attributes {stable_mosaic.version = 11 : i64} {
  func.func @_matmul_bias_kernel(%arg0: i32, %arg1: i32, %arg2: i32, %arg3: memref<2x4x8xbf16, #tpu.memory_space<vmem>>, %arg4: memref<2x4x1xf32, #tpu.memory_space<vmem>>, %arg5: memref<1x2x8x80xbf16, #tpu.memory_space<vmem>>, %arg6: memref<1x2x4x80xf32, #tpu.memory_space<vmem>>) attributes {dimension_semantics = [#tpu.dimension_semantics<parallel>, #tpu.dimension_semantics<parallel>, #tpu.dimension_semantics<parallel>], iteration_bounds = array<i64: 2, 1, 1>, scalar_prefetch = 0 : i64, scratch_operands = 0 : i64, tpu.core_type = #tpu.core_type<tc>, window_params = [{transform_indices = @transform_0, window_bounds = array<i64: 2, 4, 8>}, {transform_indices = @transform_1, window_bounds = array<i64: 2, 4, 1>}, {transform_indices = @transform_2, window_bounds = array<i64: 1, 2, 8, 80>}, {transform_indices = @transform_3, window_bounds = array<i64: 1, 2, 4, 80>}]} {
    %c0 = arith.constant 0 : index
    %c0_0 = arith.constant 0 : index
    %c0_1 = arith.constant 0 : index
    %0 = vector.load %arg3[%c0, %c0_0, %c0_1] : memref<2x4x8xbf16, #tpu.memory_space<vmem>>, vector<1x4x8xbf16>
    %1 = vector.shape_cast %0 : vector<1x4x8xbf16> to vector<4x8xbf16>
    %c0_2 = arith.constant 0 : index
    %c0_3 = arith.constant 0 : index
    %c0_4 = arith.constant 0 : index
    %c0_5 = arith.constant 0 : index
    %2 = vector.load %arg5[%c0_2, %c0_3, %c0_4, %c0_5] : memref<1x2x8x80xbf16, #tpu.memory_space<vmem>>, vector<1x1x8x80xbf16>
    %3 = vector.shape_cast %2 : vector<1x1x8x80xbf16> to vector<8x80xbf16>
    %cst = arith.constant dense<0.000000e+00> : vector<4x80xf32>
    %4 = tpu.matmul %1, %3, %cst {dimension_numbers = #tpu.dot_dimension_numbers<[1], [0], [0], [1], [0, 0, 1, 1], [], []>} : vector<4x8xbf16>, vector<8x80xbf16>, vector<4x80xf32> -> vector<4x80xf32>
    %c0_6 = arith.constant 0 : index
    %c0_7 = arith.constant 0 : index
    %c0_8 = arith.constant 0 : index
    %5 = vector.load %arg4[%c0_6, %c0_7, %c0_8] : memref<2x4x1xf32, #tpu.memory_space<vmem>>, vector<1x4x1xf32>
    %6 = vector.shape_cast %5 : vector<1x4x1xf32> to vector<4x1xf32>
    %7 = vector.broadcast %6 : vector<4x1xf32> to vector<4x80xf32>
    %8 = arith.addf %4, %7 : vector<4x80xf32>
    %c0_9 = arith.constant 0 : index
    %c0_10 = arith.constant 0 : index
    %c0_11 = arith.constant 0 : index
    %c0_12 = arith.constant 0 : index
    %9 = vector.load %arg6[%c0_9, %c0_10, %c0_11, %c0_12] : memref<1x2x4x80xf32, #tpu.memory_space<vmem>>, vector<1x1x4x80xf32>
    %10 = vector.shape_cast %9 : vector<1x1x4x80xf32> to vector<4x80xf32>
    %11 = vector.shape_cast %8 : vector<4x80xf32> to vector<1x1x4x80xf32>
    tpu.vector_store %arg6[%c0_9, %c0_10, %c0_11, %c0_12], %11 {strides = array<i32>} : memref<1x2x4x80xf32, #tpu.memory_space<vmem>>, vector<1x1x4x80xf32>,
    %c1 = arith.constant 1 : index
    %c0_13 = arith.constant 0 : index
    %c0_14 = arith.constant 0 : index
    %12 = vector.load %arg3[%c1, %c0_13, %c0_14] : memref<2x4x8xbf16, #tpu.memory_space<vmem>>, vector<1x4x8xbf16>
    %13 = vector.shape_cast %12 : vector<1x4x8xbf16> to vector<4x8xbf16>
    %c0_15 = arith.constant 0 : index
    %c1_16 = arith.constant 1 : index
    %c0_17 = arith.constant 0 : index
    %c0_18 = arith.constant 0 : index
    %14 = vector.load %arg5[%c0_15, %c1_16, %c0_17, %c0_18] : memref<1x2x8x80xbf16, #tpu.memory_space<vmem>>, vector<1x1x8x80xbf16>
    %15 = vector.shape_cast %14 : vector<1x1x8x80xbf16> to vector<8x80xbf16>
    %cst_19 = arith.constant dense<0.000000e+00> : vector<4x80xf32>
    %16 = tpu.matmul %13, %15, %cst_19 {dimension_numbers = #tpu.dot_dimension_numbers<[1], [0], [0], [1], [0, 0, 1, 1], [], []>} : vector<4x8xbf16>, vector<8x80xbf16>, vector<4x80xf32> -> vector<4x80xf32>
    %c1_20 = arith.constant 1 : index
    %c0_21 = arith.constant 0 : index
    %c0_22 = arith.constant 0 : index
    %17 = vector.load %arg4[%c1_20, %c0_21, %c0_22] : memref<2x4x1xf32, #tpu.memory_space<vmem>>, vector<1x4x1xf32>
    %18 = vector.shape_cast %17 : vector<1x4x1xf32> to vector<4x1xf32>
    %19 = vector.broadcast %18 : vector<4x1xf32> to vector<4x80xf32>
    %20 = arith.addf %16, %19 : vector<4x80xf32>
    %c0_23 = arith.constant 0 : index
    %c1_24 = arith.constant 1 : index
    %c0_25 = arith.constant 0 : index
    %c0_26 = arith.constant 0 : index
    %21 = vector.load %arg6[%c0_23, %c1_24, %c0_25, %c0_26] : memref<1x2x4x80xf32, #tpu.memory_space<vmem>>, vector<1x1x4x80xf32>
    %22 = vector.shape_cast %21 : vector<1x1x4x80xf32> to vector<4x80xf32>
    %23 = vector.shape_cast %20 : vector<4x80xf32> to vector<1x1x4x80xf32>
    tpu.vector_store %arg6[%c0_23, %c1_24, %c0_25, %c0_26], %23 {strides = array<i32>} : memref<1x2x4x80xf32, #tpu.memory_space<vmem>>, vector<1x1x4x80xf32>,
    return
  }
  func.func @transform_0(%arg0: i32, %arg1: i32, %arg2: i32) -> (i32, i32, i32) {
    %c0_i32 = arith.constant 0 : i32
    %c0_i32_0 = arith.constant 0 : i32
    %c0_i32_1 = arith.constant 0 : i32
    return %arg1, %c0_i32, %c0_i32_0 : i32, i32, i32
  }
  func.func @transform_1(%arg0: i32, %arg1: i32, %arg2: i32) -> (i32, i32, i32) {
    %c0_i32 = arith.constant 0 : i32
    %c0_i32_0 = arith.constant 0 : i32
    %c0_i32_1 = arith.constant 0 : i32
    return %arg1, %c0_i32, %c0_i32_0 : i32, i32, i32
  }
  func.func @transform_2(%arg0: i32, %arg1: i32, %arg2: i32) -> (i32, i32, i32, i32) {
    %c0_i32 = arith.constant 0 : i32
    %c0_i32_0 = arith.constant 0 : i32
    return %arg0, %arg1, %c0_i32, %arg2 : i32, i32, i32, i32
  }
  func.func @transform_3(%arg0: i32, %arg1: i32, %arg2: i32) -> (i32, i32, i32, i32) {
    %c0_i32 = arith.constant 0 : i32
    %c0_i32_0 = arith.constant 0 : i32
    return %arg0, %arg1, %c0_i32, %arg2 : i32, i32, i32, i32
  }
}

module attributes {stable_mosaic.version = 11 : i64} {
  func.func @_matmul_bias_kernel(%arg0: i32, %arg1: i32, %arg2: i32, %arg3: memref<2x4x16xbf16, #tpu.memory_space<vmem>>, %arg4: memref<2x4x1xf32, #tpu.memory_space<vmem>>, %arg5: memref<1x2x16x64xbf16, #tpu.memory_space<vmem>>, %arg6: memref<1x2x4x64xf32, #tpu.memory_space<vmem>>) attributes {dimension_semantics = [#tpu.dimension_semantics<parallel>, #tpu.dimension_semantics<parallel>, #tpu.dimension_semantics<parallel>], iteration_bounds = array<i64: 2, 1, 1>, scalar_prefetch = 0 : i64, scratch_operands = 0 : i64, tpu.core_type = #tpu.core_type<tc>, window_params = [{transform_indices = @transform_0, window_bounds = array<i64: 2, 4, 16>}, {transform_indices = @transform_1, window_bounds = array<i64: 2, 4, 1>}, {transform_indices = @transform_2, window_bounds = array<i64: 1, 2, 16, 64>}, {transform_indices = @transform_3, window_bounds = array<i64: 1, 2, 4, 64>}]} {
    %c0 = arith.constant 0 : index
    %c0_0 = arith.constant 0 : index
    %c0_1 = arith.constant 0 : index
    %0 = vector.load %arg3[%c0, %c0_0, %c0_1] : memref<2x4x16xbf16, #tpu.memory_space<vmem>>, vector<1x4x16xbf16>
    %1 = vector.shape_cast %0 : vector<1x4x16xbf16> to vector<4x16xbf16>
    %c0_2 = arith.constant 0 : index
    %c0_3 = arith.constant 0 : index
    %c0_4 = arith.constant 0 : index
    %c0_5 = arith.constant 0 : index
    %2 = vector.load %arg5[%c0_2, %c0_3, %c0_4, %c0_5] : memref<1x2x16x64xbf16, #tpu.memory_space<vmem>>, vector<1x1x16x64xbf16>
    %3 = vector.shape_cast %2 : vector<1x1x16x64xbf16> to vector<16x64xbf16>
    %cst = arith.constant dense<0.000000e+00> : vector<4x64xf32>
    %4 = tpu.matmul %1, %3, %cst {dimension_numbers = #tpu.dot_dimension_numbers<[1], [0], [0], [1], [0, 0, 1, 1], [], []>} : vector<4x16xbf16>, vector<16x64xbf16>, vector<4x64xf32> -> vector<4x64xf32>
    %c0_6 = arith.constant 0 : index
    %c0_7 = arith.constant 0 : index
    %c0_8 = arith.constant 0 : index
    %5 = vector.load %arg4[%c0_6, %c0_7, %c0_8] : memref<2x4x1xf32, #tpu.memory_space<vmem>>, vector<1x4x1xf32>
    %6 = vector.shape_cast %5 : vector<1x4x1xf32> to vector<4x1xf32>
    %7 = vector.broadcast %6 : vector<4x1xf32> to vector<4x64xf32>
    %8 = arith.addf %4, %7 : vector<4x64xf32>
    %c0_9 = arith.constant 0 : index
    %c0_10 = arith.constant 0 : index
    %c0_11 = arith.constant 0 : index
    %c0_12 = arith.constant 0 : index
    %9 = vector.load %arg6[%c0_9, %c0_10, %c0_11, %c0_12] : memref<1x2x4x64xf32, #tpu.memory_space<vmem>>, vector<1x1x4x64xf32>
    %10 = vector.shape_cast %9 : vector<1x1x4x64xf32> to vector<4x64xf32>
    %11 = vector.shape_cast %8 : vector<4x64xf32> to vector<1x1x4x64xf32>
    tpu.vector_store %arg6[%c0_9, %c0_10, %c0_11, %c0_12], %11 {strides = array<i32>} : memref<1x2x4x64xf32, #tpu.memory_space<vmem>>, vector<1x1x4x64xf32>,
    %c1 = arith.constant 1 : index
    %c0_13 = arith.constant 0 : index
    %c0_14 = arith.constant 0 : index
    %12 = vector.load %arg3[%c1, %c0_13, %c0_14] : memref<2x4x16xbf16, #tpu.memory_space<vmem>>, vector<1x4x16xbf16>
    %13 = vector.shape_cast %12 : vector<1x4x16xbf16> to vector<4x16xbf16>
    %c0_15 = arith.constant 0 : index
    %c1_16 = arith.constant 1 : index
    %c0_17 = arith.constant 0 : index
    %c0_18 = arith.constant 0 : index
    %14 = vector.load %arg5[%c0_15, %c1_16, %c0_17, %c0_18] : memref<1x2x16x64xbf16, #tpu.memory_space<vmem>>, vector<1x1x16x64xbf16>
    %15 = vector.shape_cast %14 : vector<1x1x16x64xbf16> to vector<16x64xbf16>
    %cst_19 = arith.constant dense<0.000000e+00> : vector<4x64xf32>
    %16 = tpu.matmul %13, %15, %cst_19 {dimension_numbers = #tpu.dot_dimension_numbers<[1], [0], [0], [1], [0, 0, 1, 1], [], []>} : vector<4x16xbf16>, vector<16x64xbf16>, vector<4x64xf32> -> vector<4x64xf32>
    %c1_20 = arith.constant 1 : index
    %c0_21 = arith.constant 0 : index
    %c0_22 = arith.constant 0 : index
    %17 = vector.load %arg4[%c1_20, %c0_21, %c0_22] : memref<2x4x1xf32, #tpu.memory_space<vmem>>, vector<1x4x1xf32>
    %18 = vector.shape_cast %17 : vector<1x4x1xf32> to vector<4x1xf32>
    %19 = vector.broadcast %18 : vector<4x1xf32> to vector<4x64xf32>
    %20 = arith.addf %16, %19 : vector<4x64xf32>
    %c0_23 = arith.constant 0 : index
    %c1_24 = arith.constant 1 : index
    %c0_25 = arith.constant 0 : index
    %c0_26 = arith.constant 0 : index
    %21 = vector.load %arg6[%c0_23, %c1_24, %c0_25, %c0_26] : memref<1x2x4x64xf32, #tpu.memory_space<vmem>>, vector<1x1x4x64xf32>
    %22 = vector.shape_cast %21 : vector<1x1x4x64xf32> to vector<4x64xf32>
    %23 = vector.shape_cast %20 : vector<4x64xf32> to vector<1x1x4x64xf32>
    tpu.vector_store %arg6[%c0_23, %c1_24, %c0_25, %c0_26], %23 {strides = array<i32>} : memref<1x2x4x64xf32, #tpu.memory_space<vmem>>, vector<1x1x4x64xf32>,
    return
  }
  func.func @transform_0(%arg0: i32, %arg1: i32, %arg2: i32) -> (i32, i32, i32) {
    %c0_i32 = arith.constant 0 : i32
    %c0_i32_0 = arith.constant 0 : i32
    %c0_i32_1 = arith.constant 0 : i32
    return %arg1, %c0_i32, %c0_i32_0 : i32, i32, i32
  }
  func.func @transform_1(%arg0: i32, %arg1: i32, %arg2: i32) -> (i32, i32, i32) {
    %c0_i32 = arith.constant 0 : i32
    %c0_i32_0 = arith.constant 0 : i32
    %c0_i32_1 = arith.constant 0 : i32
    return %arg1, %c0_i32, %c0_i32_0 : i32, i32, i32
  }
  func.func @transform_2(%arg0: i32, %arg1: i32, %arg2: i32) -> (i32, i32, i32, i32) {
    %c0_i32 = arith.constant 0 : i32
    %c0_i32_0 = arith.constant 0 : i32
    return %arg0, %arg1, %c0_i32, %arg2 : i32, i32, i32, i32
  }
  func.func @transform_3(%arg0: i32, %arg1: i32, %arg2: i32) -> (i32, i32, i32, i32) {
    %c0_i32 = arith.constant 0 : i32
    %c0_i32_0 = arith.constant 0 : i32
    return %arg0, %arg1, %c0_i32, %arg2 : i32, i32, i32, i32
  }
}

</mosaic_0001>

<bundles_post_ra>
// kernel: _lambda_.8
= control target key start
LH: loop header
LB: loop body
LE: loop exit
PB: predicated region body
PF: predicated region fallthrough
CT: control target
= control target key end

     0   :  { %s643_s12 = smov 0   ;;  %s645_s13 = smov 0   ;;  %s688_s0 = inlined_call_operand.vmem [shape: bf16[2,4,8], index: 0, kind: input, shape index: {}]   ;;  %s689_s1 = inlined_call_operand.vmem [shape: f32[2,4,1], index: 1, kind: input, shape index: {}]   ;;  %s690_s2 = inlined_call_operand.vmem [shape: bf16[2,2,8,125], index: 2, kind: input, shape index: {}]   ;;  %s691_s3 = inlined_call_operand.vmem [shape: f32[2,2,4,125], index: 3, kind: output, shape index: {}]  }
   0x1   :  { %s647_s14 = smov 0  }
   0x2 LB: > { %s32_s15 = sadd.s32 1, %s614_s13  ;;  %p537_p0 = scmp.ge.s32.totalorder %s618_s14, 1  ;;  %s618_s14 = sphi %s647_s14, %s13_s14   ;;  %s614_s13 = sphi %s645_s13, %s693_s13   ;;  %s610_s12 = sphi %s643_s12, %s692_s12  }
   0x3   : > { %p34_p1 = scmp.ge.s32.totalorder %s32_s15, 2  ;;  %p194_p2 = scmp.lt.s32.totalorder %s618_s14, 3 }
   0x5   : > { %s695_s15 = smov (%p34_p1, %s32_s15), 0  ;;  %p195_p3 = pnand %p537_p0, %p194_p2 }
   0x6   : > { %p255_p4 = scmp.lt.s32.totalorder (!%p195_p3), %s610_s12, 1  ;;  %v620_v0 = vmov (!%p195_p3), 0.0   ;;  %v283_v1 = vld [vmem:[%s689_s1] sm:$0xf] (!%p195_p3)  ;;  %vm621_vm0 = vmmov (!%p195_p3), 0   ;;  %v622_v2 = vmov (!%p195_p3), 0  }
   0x7   : > { %198 = sbr.rel (%p195_p3) target bundleno = 237 (0xed), region = 32  ;;  %556 = vmatprep.subr.bf16.mxu0 (!%p195_p3), %v620_v0  ;;  %562 = vmatprep.subr.bf16.mxu1 (!%p195_p3), %v620_v0  ;;  %vm293_vm1 = vcmask (!%p195_p3), 1043456   ;;  %v545_v5 = vld [vmem:[%s689_s1 + $0x4] sm:$0xf] (!%p195_p3)  ;;  %v281_v8 = vld [vmem:[%s688_s0] sm:$0x3] (!%p195_p3) }
   0x8   : > { %558 = vmatprep.mubr.msk.bf16.mxu0 (!%p195_p3), %vm621_vm0, %v620_v0  ;;  %564 = vmatprep.mubr.msk.bf16.mxu1 (!%p195_p3), %vm621_vm0, %v620_v0  ;;  %vm289_vm2 = vcmask (!%p195_p3), 64512   ;;  %v543_v9 = vld [vmem:[%s688_s0 + $0x2] sm:$0x3] (!%p195_p3)  ;;  %vm337_vm3 = vcmask (!%p195_p3), 1018880  }
   0x9   : > { %595 = vset.pattern.permute.xlu0 (!%p195_p3), %v622_v2 }
   0xa   : > { %286 = vperm.xlu0 (!%p195_p3), %595, %v283_v1  }
   0xe   : > { %s697_s12 = smov (!%p255_p4, %s610_s12), 1  ;;  %347 = vperm.xlu0 %595, %v545_v5  }
   0xf   : > { %s550_s18 = sshll.u32 %s697_s12, 3 }
  0x10   : > { %s265_s21 = scalar_lea.vmem %s690_s2, %s550_s18  ;;  %s278_s30 = scalar_lea.vmem %s691_s3, %s550_s18 }
  0x11   : > { %v282_v3 = vld [vmem:[%s265_s21] sm:$0xf]  ;;  %v544_v4 = vld [vmem:[%s265_s21 + $0x4] sm:$0xf] }
  0x12   : > { %v295_v6 = vsel %vm293_vm1, %v282_v3, 0  ;;  %v354_v7 = vsel %vm293_vm1, %v544_v4, 0 }
  0x13   : > { %557 = vmatpush3.bf16.msra.mxu0 %v295_v6  ;;  %563 = vmatpush3.bf16.msra.mxu1 %v354_v7 }
  0x16   : > { %559 = vmatmul.mubr.msk.bf16.vlgmr.msra.gmra.mrb[0].mxu0 %vm289_vm2, %v281_v8  ;;  %565 = vmatmul.mubr.msk.bf16.vlgmr.msra.gmra.mrb[0].mxu1 %vm289_vm2, %v543_v9 }
  0x89   : > { %v287_v10 = vpop.permute.xlu0 %286 }
  0x8d   : > { %v348_v11 = vpop.permute.xlu0 %347 }
  0xe9   : > { %v331_v12 = vpop.f32.mrb[0].mxu0  ;;  %v390_v13 = vpop.f32.mrb[0].mxu1 }
  0xea   : > { %v332_v14 = vadd.f32 %v331_v12, %v287_v10  ;;  %v391_v15 = vadd.f32 %v390_v13, %v348_v11  ;;  %v560_v16 = vpop.f32.mrb[1].mxu0  ;;  %v566_v17 = vpop.f32.mrb[1].mxu1 }
  0xeb   : > { %v334_v18 = vpop.f32.mrb[2].mxu0  ;;  %v393_v19 = vpop.f32.mrb[2].mxu1 }
  0xec   : > { %338 = vst.msk [vmem:[%s278_s30] sm:$0xf] %vm337_vm3, %v332_v14  ;;  %547 = vst.msk [vmem:[%s278_s30 + $0x4] sm:$0xf] %vm337_vm3, %v391_v15  ;;  %v561_v20 = vpop.f32.mrb[3].mxu0  ;;  %v567_v21 = vpop.f32.mrb[3].mxu1 }
  0xed PF: > { %s13_s14 = sadd.s32 1, %s618_s14   ;;  %s692_s12 = smov %s614_s13 }
  0xee   : > { %p10_p5 = scmp.ge.s32.totalorder %s13_s14, 4   ;;  %s693_s13 = smov %s695_s15 }
  0xf0   :  { %12 = sbr.rel (!%p10_p5) target bundleno = 2 (0x2), region = 72 }

// kernel: _lambda_.9
= control target key start
LH: loop header
LB: loop body
LE: loop exit
PB: predicated region body
PF: predicated region fallthrough
CT: control target
= control target key end

     0   :  { %s643_s12 = smov 0   ;;  %s645_s13 = smov 0   ;;  %s688_s0 = inlined_call_operand.vmem [shape: bf16[2,4,8], index: 0, kind: input, shape index: {}]   ;;  %s689_s1 = inlined_call_operand.vmem [shape: f32[2,4,1], index: 1, kind: input, shape index: {}]   ;;  %s690_s2 = inlined_call_operand.vmem [shape: bf16[2,2,8,100], index: 2, kind: input, shape index: {}]   ;;  %s691_s3 = inlined_call_operand.vmem [shape: f32[2,2,4,100], index: 3, kind: output, shape index: {}]  }
   0x1   :  { %s647_s14 = smov 0  }
   0x2 LB: > { %s32_s15 = sadd.s32 1, %s614_s13  ;;  %p537_p0 = scmp.ge.s32.totalorder %s618_s14, 1  ;;  %s618_s14 = sphi %s647_s14, %s13_s14   ;;  %s614_s13 = sphi %s645_s13, %s693_s13   ;;  %s610_s12 = sphi %s643_s12, %s692_s12  }
   0x3   : > { %p34_p1 = scmp.ge.s32.totalorder %s32_s15, 2  ;;  %p194_p2 = scmp.lt.s32.totalorder %s618_s14, 3 }
   0x5   : > { %s695_s15 = smov (%p34_p1, %s32_s15), 0  ;;  %p195_p3 = pnand %p537_p0, %p194_p2 }
   0x6   : > { %p255_p4 = scmp.lt.s32.totalorder (!%p195_p3), %s610_s12, 1  ;;  %v620_v0 = vmov (!%p195_p3), 0.0   ;;  %v283_v1 = vld [vmem:[%s689_s1] sm:$0xf] (!%p195_p3)  ;;  %vm621_vm0 = vmmov (!%p195_p3), 0   ;;  %v622_v2 = vmov (!%p195_p3), 0  }
   0x7   : > { %198 = sbr.rel (%p195_p3) target bundleno = 237 (0xed), region = 32  ;;  %556 = vmatprep.subr.bf16.mxu0 (!%p195_p3), %v620_v0  ;;  %562 = vmatprep.subr.bf16.mxu1 (!%p195_p3), %v620_v0  ;;  %vm293_vm1 = vcmask (!%p195_p3), 1043456   ;;  %v545_v5 = vld [vmem:[%s689_s1 + $0x4] sm:$0xf] (!%p195_p3)  ;;  %v281_v8 = vld [vmem:[%s688_s0] sm:$0x3] (!%p195_p3) }
   0x8   : > { %558 = vmatprep.mubr.msk.bf16.mxu0 (!%p195_p3), %vm621_vm0, %v620_v0  ;;  %564 = vmatprep.mubr.msk.bf16.mxu1 (!%p195_p3), %vm621_vm0, %v620_v0  ;;  %vm289_vm2 = vcmask (!%p195_p3), 64512   ;;  %v543_v9 = vld [vmem:[%s688_s0 + $0x2] sm:$0x3] (!%p195_p3)  ;;  %vm337_vm3 = vcmask (!%p195_p3), 814080  }
   0x9   : > { %595 = vset.pattern.permute.xlu0 (!%p195_p3), %v622_v2 }
   0xa   : > { %286 = vperm.xlu0 (!%p195_p3), %595, %v283_v1  }
   0xe   : > { %s697_s12 = smov (!%p255_p4, %s610_s12), 1  ;;  %347 = vperm.xlu0 %595, %v545_v5  }
   0xf   : > { %s550_s18 = sshll.u32 %s697_s12, 3 }
  0x10   : > { %s265_s21 = scalar_lea.vmem %s690_s2, %s550_s18  ;;  %s278_s30 = scalar_lea.vmem %s691_s3, %s550_s18 }
  0x11   : > { %v282_v3 = vld [vmem:[%s265_s21] sm:$0xf]  ;;  %v544_v4 = vld [vmem:[%s265_s21 + $0x4] sm:$0xf] }
  0x12   : > { %v295_v6 = vsel %vm293_vm1, %v282_v3, 0  ;;  %v354_v7 = vsel %vm293_vm1, %v544_v4, 0 }
  0x13   : > { %557 = vmatpush3.bf16.msra.mxu0 %v295_v6  ;;  %563 = vmatpush3.bf16.msra.mxu1 %v354_v7 }
  0x16   : > { %559 = vmatmul.mubr.msk.bf16.vlgmr.msra.gmra.mrb[0].mxu0 %vm289_vm2, %v281_v8  ;;  %565 = vmatmul.mubr.msk.bf16.vlgmr.msra.gmra.mrb[0].mxu1 %vm289_vm2, %v543_v9 }
  0x89   : > { %v287_v10 = vpop.permute.xlu0 %286 }
  0x8d   : > { %v348_v11 = vpop.permute.xlu0 %347 }
  0xe9   : > { %v331_v12 = vpop.f32.mrb[0].mxu0  ;;  %v390_v13 = vpop.f32.mrb[0].mxu1 }
  0xea   : > { %v332_v14 = vadd.f32 %v331_v12, %v287_v10  ;;  %v391_v15 = vadd.f32 %v390_v13, %v348_v11  ;;  %v560_v16 = vpop.f32.mrb[1].mxu0  ;;  %v566_v17 = vpop.f32.mrb[1].mxu1 }
  0xeb   : > { %v334_v18 = vpop.f32.mrb[2].mxu0  ;;  %v393_v19 = vpop.f32.mrb[2].mxu1 }
  0xec   : > { %338 = vst.msk [vmem:[%s278_s30] sm:$0xf] %vm337_vm3, %v332_v14  ;;  %547 = vst.msk [vmem:[%s278_s30 + $0x4] sm:$0xf] %vm337_vm3, %v391_v15  ;;  %v561_v20 = vpop.f32.mrb[3].mxu0  ;;  %v567_v21 = vpop.f32.mrb[3].mxu1 }
  0xed PF: > { %s13_s14 = sadd.s32 1, %s618_s14   ;;  %s692_s12 = smov %s614_s13 }
  0xee   : > { %p10_p5 = scmp.ge.s32.totalorder %s13_s14, 4   ;;  %s693_s13 = smov %s695_s15 }
  0xf0   :  { %12 = sbr.rel (!%p10_p5) target bundleno = 2 (0x2), region = 72 }

// kernel: _lambda_.11
= control target key start
LH: loop header
LB: loop body
LE: loop exit
PB: predicated region body
PF: predicated region fallthrough
CT: control target
= control target key end

     0   :  { %s643_s12 = smov 0   ;;  %s645_s13 = smov 0   ;;  %s688_s0 = inlined_call_operand.vmem [shape: bf16[2,4,8], index: 0, kind: input, shape index: {}]   ;;  %s689_s1 = inlined_call_operand.vmem [shape: f32[2,4,1], index: 1, kind: input, shape index: {}]   ;;  %s690_s2 = inlined_call_operand.vmem [shape: bf16[2,2,8,80], index: 2, kind: input, shape index: {}]   ;;  %s691_s3 = inlined_call_operand.vmem [shape: f32[2,2,4,80], index: 3, kind: output, shape index: {}]  }
   0x1   :  { %s647_s14 = smov 0  }
   0x2 LB: > { %s32_s15 = sadd.s32 1, %s614_s13  ;;  %p537_p0 = scmp.ge.s32.totalorder %s618_s14, 1  ;;  %s618_s14 = sphi %s647_s14, %s13_s14   ;;  %s614_s13 = sphi %s645_s13, %s693_s13   ;;  %s610_s12 = sphi %s643_s12, %s692_s12  }
   0x3   : > { %p34_p1 = scmp.ge.s32.totalorder %s32_s15, 2  ;;  %p194_p2 = scmp.lt.s32.totalorder %s618_s14, 3 }
   0x5   : > { %s695_s15 = smov (%p34_p1, %s32_s15), 0  ;;  %p195_p3 = pnand %p537_p0, %p194_p2 }
   0x6   : > { %p255_p4 = scmp.lt.s32.totalorder (!%p195_p3), %s610_s12, 1  ;;  %v620_v0 = vmov (!%p195_p3), 0.0   ;;  %v283_v1 = vld [vmem:[%s689_s1] sm:$0xf] (!%p195_p3)  ;;  %vm621_vm0 = vmmov (!%p195_p3), 0   ;;  %v622_v2 = vmov (!%p195_p3), 0  }
   0x7   : > { %198 = sbr.rel (%p195_p3) target bundleno = 237 (0xed), region = 32  ;;  %556 = vmatprep.subr.bf16.mxu0 (!%p195_p3), %v620_v0  ;;  %562 = vmatprep.subr.bf16.mxu1 (!%p195_p3), %v620_v0  ;;  %vm293_vm1 = vcmask (!%p195_p3), 1043456   ;;  %v545_v5 = vld [vmem:[%s689_s1 + $0x4] sm:$0xf] (!%p195_p3)  ;;  %v281_v8 = vld [vmem:[%s688_s0] sm:$0x3] (!%p195_p3) }
   0x8   : > { %558 = vmatprep.mubr.msk.bf16.mxu0 (!%p195_p3), %vm621_vm0, %v620_v0  ;;  %564 = vmatprep.mubr.msk.bf16.mxu1 (!%p195_p3), %vm621_vm0, %v620_v0  ;;  %vm289_vm2 = vcmask (!%p195_p3), 64512   ;;  %v543_v9 = vld [vmem:[%s688_s0 + $0x2] sm:$0x3] (!%p195_p3)  ;;  %vm337_vm3 = vcmask (!%p195_p3), 650240  }
   0x9   : > { %595 = vset.pattern.permute.xlu0 (!%p195_p3), %v622_v2 }
   0xa   : > { %286 = vperm.xlu0 (!%p195_p3), %595, %v283_v1  }
   0xe   : > { %s697_s12 = smov (!%p255_p4, %s610_s12), 1  ;;  %347 = vperm.xlu0 %595, %v545_v5  }
   0xf   : > { %s550_s18 = sshll.u32 %s697_s12, 3 }
  0x10   : > { %s265_s21 = scalar_lea.vmem %s690_s2, %s550_s18  ;;  %s278_s30 = scalar_lea.vmem %s691_s3, %s550_s18 }
  0x11   : > { %v282_v3 = vld [vmem:[%s265_s21] sm:$0xf]  ;;  %v544_v4 = vld [vmem:[%s265_s21 + $0x4] sm:$0xf] }
  0x12   : > { %v295_v6 = vsel %vm293_vm1, %v282_v3, 0  ;;  %v354_v7 = vsel %vm293_vm1, %v544_v4, 0 }
  0x13   : > { %557 = vmatpush3.bf16.msra.mxu0 %v295_v6  ;;  %563 = vmatpush3.bf16.msra.mxu1 %v354_v7 }
  0x16   : > { %559 = vmatmul.mubr.msk.bf16.vlgmr.msra.gmra.mrb[0].mxu0 %vm289_vm2, %v281_v8  ;;  %565 = vmatmul.mubr.msk.bf16.vlgmr.msra.gmra.mrb[0].mxu1 %vm289_vm2, %v543_v9 }
  0x89   : > { %v287_v10 = vpop.permute.xlu0 %286 }
  0x8d   : > { %v348_v11 = vpop.permute.xlu0 %347 }
  0xe9   : > { %v331_v12 = vpop.f32.mrb[0].mxu0  ;;  %v390_v13 = vpop.f32.mrb[0].mxu1 }
  0xea   : > { %v332_v14 = vadd.f32 %v331_v12, %v287_v10  ;;  %v391_v15 = vadd.f32 %v390_v13, %v348_v11  ;;  %v560_v16 = vpop.f32.mrb[1].mxu0  ;;  %v566_v17 = vpop.f32.mrb[1].mxu1 }
  0xeb   : > { %v334_v18 = vpop.f32.mrb[2].mxu0  ;;  %v393_v19 = vpop.f32.mrb[2].mxu1 }
  0xec   : > { %338 = vst.msk [vmem:[%s278_s30] sm:$0xf] %vm337_vm3, %v332_v14  ;;  %547 = vst.msk [vmem:[%s278_s30 + $0x4] sm:$0xf] %vm337_vm3, %v391_v15  ;;  %v561_v20 = vpop.f32.mrb[3].mxu0  ;;  %v567_v21 = vpop.f32.mrb[3].mxu1 }
  0xed PF: > { %s13_s14 = sadd.s32 1, %s618_s14   ;;  %s692_s12 = smov %s614_s13 }
  0xee   : > { %p10_p5 = scmp.ge.s32.totalorder %s13_s14, 4   ;;  %s693_s13 = smov %s695_s15 }
  0xf0   :  { %12 = sbr.rel (!%p10_p5) target bundleno = 2 (0x2), region = 72 }

// kernel: _lambda_.15
= control target key start
LH: loop header
LB: loop body
LE: loop exit
PB: predicated region body
PF: predicated region fallthrough
CT: control target
= control target key end

     0   :  { %s661_s12 = smov 0   ;;  %s663_s13 = smov 0   ;;  %s706_s0 = inlined_call_operand.vmem [shape: bf16[2,4,16], index: 0, kind: input, shape index: {}]   ;;  %s707_s1 = inlined_call_operand.vmem [shape: f32[2,4,1], index: 1, kind: input, shape index: {}]   ;;  %s708_s2 = inlined_call_operand.vmem [shape: bf16[2,2,16,64], index: 2, kind: input, shape index: {}]   ;;  %s709_s3 = inlined_call_operand.vmem [shape: f32[2,2,4,64], index: 3, kind: output, shape index: {}]  }
   0x1   :  { %s665_s14 = smov 0  }
   0x2 LB: > { %s32_s15 = sadd.s32 1, %s632_s13  ;;  %p550_p0 = scmp.ge.s32.totalorder %s636_s14, 1  ;;  %s636_s14 = sphi %s665_s14, %s13_s14   ;;  %s632_s13 = sphi %s663_s13, %s711_s13   ;;  %s628_s12 = sphi %s661_s12, %s710_s12  }
   0x3   : > { %p34_p1 = scmp.ge.s32.totalorder %s32_s15, 2  ;;  %p195_p2 = scmp.lt.s32.totalorder %s636_s14, 3 }
   0x5   : > { %s713_s15 = smov (%p34_p1, %s32_s15), 0  ;;  %p196_p3 = pnand %p550_p0, %p195_p2 }
   0x6   : > { %p257_p4 = scmp.lt.s32.totalorder (!%p196_p3), %s628_s12, 1  ;;  %v638_v0 = vmov (!%p196_p3), 0.0   ;;  %v287_v1 = vld [vmem:[%s707_s1] sm:$0xf] (!%p196_p3)  ;;  %vm639_vm0 = vmmov (!%p196_p3), 0   ;;  %v640_v2 = vmov (!%p196_p3), 0  }
   0x7   : > { %199 = sbr.rel (%p196_p3) target bundleno = 236 (0xec), region = 32  ;;  %572 = vmatprep.subr.bf16.mxu0 (!%p196_p3), %v638_v0  ;;  %578 = vmatprep.subr.bf16.mxu1 (!%p196_p3), %v638_v0  ;;  %v560_v3 = vld [vmem:[%s707_s1 + $0x4] sm:$0xf] (!%p196_p3)  ;;  %v284_v6 = vld [vmem:[%s706_s0] sm:$0x3] (!%p196_p3)  ;;  %vm299_vm1 = vcmask (!%p196_p3), 130048  }
   0x8   : > { %574 = vmatprep.mubr.msk.bf16.mxu0 (!%p196_p3), %vm639_vm0, %v638_v0  ;;  %580 = vmatprep.mubr.msk.bf16.mxu1 (!%p196_p3), %vm639_vm0, %v638_v0  ;;  %v557_v7 = vld [vmem:[%s706_s0 + $0x2] sm:$0x3] (!%p196_p3)  ;;  %vm343_vm2 = vcmask (!%p196_p3), 519168  }
   0x9   : > { %611 = vset.pattern.permute.xlu0 (!%p196_p3), %v640_v2 }
   0xa   : > { %290 = vperm.xlu0 (!%p196_p3), %611, %v287_v1  }
   0xe   : > { %s715_s12 = smov (!%p257_p4, %s628_s12), 1  ;;  %354 = vperm.xlu0 %611, %v560_v3  }
   0xf   : > { %s566_s18 = sshll.u32 %s715_s12, 4  ;;  %s567_s28 = sshll.u32 %s715_s12, 3 }
  0x10   : > { %s268_s21 = scalar_lea.vmem %s708_s2, %s566_s18  ;;  %s281_s4 = scalar_lea.vmem %s709_s3, %s567_s28 }
  0x11   : > { %v612_v4 = vld [vmem:[%s268_s21] sm:$0xff]   ;;  %v613_v5 = vld [vmem:[%s268_s21 + $0x8] sm:$0xff]  }
  0x12   : > { %573 = vmatpush3.bf16.msra.mxu0 %v612_v4  ;;  %579 = vmatpush3.bf16.msra.mxu1 %v613_v5 }
  0x15   : > { %575 = vmatmul.mubr.msk.bf16.vlgmr.msra.gmra.mrb[0].mxu0 %vm299_vm1, %v284_v6  ;;  %581 = vmatmul.mubr.msk.bf16.vlgmr.msra.gmra.mrb[0].mxu1 %vm299_vm1, %v557_v7 }
  0x89   : > { %v291_v8 = vpop.permute.xlu0 %290 }
  0x8d   : > { %v355_v9 = vpop.permute.xlu0 %354 }
  0xe8   : > { %v337_v10 = vpop.f32.mrb[0].mxu0  ;;  %v400_v12 = vpop.f32.mrb[0].mxu1 }
  0xe9   : > { %v338_v11 = vadd.f32 %v337_v10, %v291_v8  ;;  %v576_v13 = vpop.f32.mrb[1].mxu0  ;;  %v401_v14 = vadd.f32 %v400_v12, %v355_v9  ;;  %v582_v15 = vpop.f32.mrb[1].mxu1 }
  0xea   : > { %v340_v16 = vpop.f32.mrb[2].mxu0  ;;  %v403_v17 = vpop.f32.mrb[2].mxu1 }
  0xeb   : > { %344 = vst.msk [vmem:[%s281_s4] sm:$0xf] %vm343_vm2, %v338_v11  ;;  %v577_v18 = vpop.f32.mrb[3].mxu0  ;;  %563 = vst.msk [vmem:[%s281_s4 + $0x4] sm:$0xf] %vm343_vm2, %v401_v14  ;;  %v583_v19 = vpop.f32.mrb[3].mxu1 }
  0xec PF: > { %s13_s14 = sadd.s32 1, %s636_s14   ;;  %s710_s12 = smov %s632_s13 }
  0xed   : > { %p10_p5 = scmp.ge.s32.totalorder %s13_s14, 4   ;;  %s711_s13 = smov %s713_s15 }
  0xef   :  { %12 = sbr.rel (!%p10_p5) target bundleno = 2 (0x2), region = 72 }

</bundles_post_ra>
